<compile_context>
chip_gen: v5e
topology: v5e:2x2
jax: 0.10.0
libtpu: 0.0.40
codegen_flags: <defaults>
</compile_context>

<pallas_src>
import functools
import math

import jax
import jax.numpy as jnp
from jax.experimental import pallas as pl
from jax.experimental.pallas import tpu as pltpu


# ---------------------------------------------------------------------------
# Interpolation-matrix construction (trace-time glue, exact PyTorch semantics)
# ---------------------------------------------------------------------------
def _interp_matrix(in_size: int, out_size: int, align_corners: bool) -> jnp.ndarray:
    """(out_size, in_size) 1-D linear-interpolation matrix, F.interpolate rules."""
    i = jnp.arange(out_size, dtype=jnp.float32)
    if align_corners:
        scale = (in_size - 1) / (out_size - 1) if out_size > 1 else 0.0
        src = i * scale
    else:
        scale = in_size / out_size
        src = (i + 0.5) * scale - 0.5
        src = jnp.maximum(src, 0.0)          # PyTorch clamps negative sources
    i0 = jnp.clip(jnp.floor(src).astype(jnp.int32), 0, in_size - 1)
    i1 = jnp.minimum(i0 + 1, in_size - 1)
    w1 = src - i0.astype(jnp.float32)
    w0 = 1.0 - w1
    oh0 = jax.nn.one_hot(i0, in_size, dtype=jnp.float32)
    oh1 = jax.nn.one_hot(i1, in_size, dtype=jnp.float32)
    return w0[:, None] * oh0 + w1[:, None] * oh1


# ---------------------------------------------------------------------------
# Kernels
# ---------------------------------------------------------------------------
def _resize_kernel_fused(x_ref, rh_ref, rwT_ref, o_ref, *, c_tile, h_in, h_out):
    # x_ref  : (c_tile*h_in,  W_in)   block of c_tile stacked image planes
    # rh_ref : (h_out, h_in)          H-interpolation matrix (f32, resident)
    # rwT_ref: (W_in, W_out)          W-interpolation matrix, pre-transposed
    # o_ref  : (c_tile*h_out, W_out)
    w_out = o_ref.shape[-1]

    x = x_ref[...].astype(jnp.float32)                         # one upcast pass

    # (1) Fused W contraction: ONE matmul for every plane in the block.
    #     (c_tile*h_in, W_in) @ (W_in, W_out); f32 accumulate, kept in f32
    #     (no bf16 downcast of the intermediate -> matches PyTorch numerics).
    tmp = jnp.dot(x, rwT_ref[...], preferred_element_type=jnp.float32)

    # (2) Fused H contraction: one batched dot_general over all planes
    #     (flash-attention-style 'cok,ckw->cow' dimension numbers), then a
    #     single contiguous, lane-dense store of the whole block.
    #     h_in % 8 == 0 and h_out % 8 == 0 are guaranteed by the wrapper, so
    #     both reshapes are sublane-tile aligned (no hidden relayout copies).
    tmp3 = tmp.reshape(c_tile, h_in, w_out)
    rh_b = jnp.broadcast_to(rh_ref[...][None, :, :], (c_tile, h_out, h_in))
    out3 = jnp.einsum("cok,ckw->cow", rh_b, tmp3,
                      preferred_element_type=jnp.float32)
    o_ref[...] = out3.reshape(c_tile * h_out, w_out).astype(o_ref.dtype)


def _resize_kernel_loop(x_ref, rh_ref, rwT_ref, o_ref, *, c_tile, h_in, h_out):
    # Fallback for plane heights that are not sublane-aligned (h % 8 != 0):
    # fused W matmul + small bounded per-plane H matmuls (c_tile capped).
    x = x_ref[...].astype(jnp.float32)
    tmp = jnp.dot(x, rwT_ref[...], preferred_element_type=jnp.float32)
    rh = rh_ref[...]
    for c in range(c_tile):
        plane = tmp[c * h_in:(c + 1) * h_in, :]
        o_ref[c * h_out:(c + 1) * h_out, :] = jnp.dot(
            rh, plane, preferred_element_type=jnp.float32).astype(o_ref.dtype)


# ---------------------------------------------------------------------------
# Generation-aware VMEM budgets
# ---------------------------------------------------------------------------
@functools.lru_cache(maxsize=1)
def _vmem_capacity_bytes() -> int:
    try:
        info = pltpu.get_tpu_info()
        cap = getattr(info, "vmem_capacity_bytes", None)
        if cap:
            return int(cap)
    except Exception:
        pass
    return 64 * 1024 * 1024   # conservative fallback: v7x per-TensorCore VMEM


# ---------------------------------------------------------------------------
# Tile-size selection (VMEM-budgeted, layout-legal, megacore/pipeline aware)
# ---------------------------------------------------------------------------
def _pick_c_tile(n_planes, h_in, w_in, h_out, w_out, itemsize,
                 block_budget, max_ct):
    def block_bytes(ct):
        io = 2 * ct * (h_in * w_in + h_out * w_out) * itemsize        # dbl-buffered blocks
        consts = 2 * (h_out * h_in + w_in * w_out) * 4                # dbl-buffered rh / rwT
        interm = ct * (h_in * w_in + h_in * w_out + h_out * h_in      # f32 temporaries
                       + 2 * h_out * w_out) * 4
        return io + consts + interm

    legal = []
    for ct in range(1, n_planes + 1):
        if n_planes % ct:
            continue
        ok_in = (ct * h_in) % 8 == 0 or ct == n_planes
        ok_out = (ct * h_out) % 8 == 0 or ct == n_planes
        if not (ok_in and ok_out):
            continue
        if ct > max_ct and ct != n_planes:
            continue
        legal.append(ct)
    if not legal:
        return n_planes                       # full-extent block is always layout-legal

    in_budget = [ct for ct in legal if block_bytes(ct) <= block_budget]
    if not in_budget:
        # Never silently blow the budget with a giant block: take the smallest
        # layout-legal tile (minimum VMEM pressure).
        # TODO(synk): spatial (H/W) tiling for single planes too big for VMEM.
        return min(legal)

    def steps(ct):
        return n_planes // ct

    # Keep blocks reasonably big (>= ~1 MiB, or the best we can do), then
    # prefer an even number of grid steps >= 4 so v7x's 2 TensorCores share
    # the "parallel" axis evenly and the pipeline has DMA to overlap.
    biggest = max(in_budget)
    min_block = min(1 << 20, block_bytes(biggest))
    good = [ct for ct in in_budget if block_bytes(ct) >= min_block]
    pref = [ct for ct in good if steps(ct) >= 4 and steps(ct) % 2 == 0]
    if not pref:
        pref = [ct for ct in good if steps(ct) >= 2]
    if not pref:
        pref = good
    return max(pref)


# ---------------------------------------------------------------------------
# Wrapper
# ---------------------------------------------------------------------------
@functools.partial(jax.jit, static_argnames=("scale_factor", "mode", "align_corners"))
def resize(x, scale_factor=2.0, mode="bilinear", align_corners=False):
    """Pallas equivalent of Resize(scale_factor, mode, align_corners)(x), NCHW."""
    assert mode == "bilinear", "only bilinear mode implemented"
    # TODO(synk): 'nearest' / 'bicubic' modes not implemented (module uses bilinear).
    B, C, H, W = x.shape
    if isinstance(scale_factor, (tuple, list)):
        sf_h, sf_w = scale_factor
    else:
        sf_h = sf_w = scale_factor
    # floor() of the double product == PyTorch's output-size computation.
    H_out = int(math.floor(H * float(sf_h)))
    W_out = int(math.floor(W * float(sf_w)))

    # Interpolation matrices stay f32 (PyTorch interpolates in f32 even for
    # bf16 inputs); bf16 activations still move over DMA as bf16.
    rh = _interp_matrix(H, H_out, align_corners)            # (H_out, H)
    rwT = _interp_matrix(W, W_out, align_corners).T         # (W, W_out)

    n_planes = B * C
    itemsize = jnp.dtype(x.dtype).itemsize

    cap = _vmem_capacity_bytes()
    vmem_limit = int(0.6 * cap)                              # ~38 MiB v7x, ~76 MiB v5e/v6e
    block_budget = int(0.2 * cap)                            # ~13 MiB v7x, ~25 MiB v5e/v6e

    use_fused = (H % 8 == 0) and (H_out % 8 == 0)            # aligned in-kernel reshapes
    max_ct = n_planes if use_fused else min(n_planes, 16)    # bound fallback unroll

    c_tile = _pick_c_tile(n_planes, H, W, H_out, W_out, itemsize,
                          block_budget, max_ct)
    num_tiles = n_planes // c_tile

    kern = _resize_kernel_fused if use_fused else _resize_kernel_loop

    # Contiguous row-major reshape: free metadata change, 2-D lane-dense blocks.
    x2 = x.reshape(n_planes * H, W)

    out2 = pl.pallas_call(
        functools.partial(kern, c_tile=c_tile, h_in=H, h_out=H_out),
        out_shape=jax.ShapeDtypeStruct((n_planes * H_out, W_out), x.dtype),
        grid_spec=pltpu.PrefetchScalarGridSpec(
            num_scalar_prefetch=0,
            grid=(num_tiles,),
            in_specs=[
                pl.BlockSpec((c_tile * H, W), lambda i: (i, 0)),
                pl.BlockSpec((H_out, H), lambda i: (0, 0)),   # constant -> resident
                pl.BlockSpec((W, W_out), lambda i: (0, 0)),   # constant -> resident
            ],
            out_specs=pl.BlockSpec((c_tile * H_out, W_out), lambda i: (i, 0)),
        ),
        compiler_params=pltpu.CompilerParams(
            dimension_semantics=("parallel",),
            vmem_limit_bytes=vmem_limit,
        ),
    )(x2, rh, rwT)
    return out2.reshape(B, C, H_out, W_out)


# ---------------------------------------------------------------------------
# Pure-JAX reference (same math, no Pallas)
# ---------------------------------------------------------------------------
def _resize_ref(x, scale_factor, align_corners):
    B, C, H, W = x.shape
    if isinstance(scale_factor, (tuple, list)):
        sf_h, sf_w = scale_factor
    else:
        sf_h = sf_w = scale_factor
    H_out = int(math.floor(H * float(sf_h)))
    W_out = int(math.floor(W * float(sf_w)))
    rh = _interp_matrix(H, H_out, align_corners)
    rw = _interp_matrix(W, W_out, align_corners)
    y = jnp.einsum("oh,bchw,pw->bcop", rh, x.astype(jnp.float32), rw)
    return y.astype(x.dtype)


if __name__ == "__main__":
    key = jax.random.PRNGKey(0)

    # Primary check (module-sized small input).
    B, C, H, W = 2, 4, 16, 16
    x = jax.random.normal(key, (B, C, H, W), dtype=jnp.float32)
    out = jax.block_until_ready(
        resize(x, scale_factor=2.0, mode="bilinear", align_corners=False))
    ref = _resize_ref(x, 2.0, False)
    assert out.shape == (B, C, 32, 32)
    assert jnp.allclose(out, ref, atol=1e-5, rtol=1e-5)

    # Multi-grid-step check (exercises the plane-tiled pipeline / index_map).
    x2 = jax.random.normal(jax.random.PRNGKey(1), (2, 16, 32, 32), dtype=jnp.float32)
    out2 = jax.block_until_ready(resize(x2, scale_factor=2.0))
    assert jnp.allclose(out2, _resize_ref(x2, 2.0, False), atol=1e-5, rtol=1e-5)

    # bf16 input: bf16 over DMA, f32 interpolation (PyTorch-consistent).
    xb = x.astype(jnp.bfloat16)
    outb = jax.block_until_ready(resize(xb, scale_factor=2.0))
    refb = _resize_ref(xb, 2.0, False)
    assert jnp.allclose(outb.astype(jnp.float32), refb.astype(jnp.float32),
                        atol=2e-2, rtol=2e-2)

    print("KERNEL_OK")
</pallas_src>

<mosaic_0001>
module attributes {stable_mosaic.version = 11 : i64} {
  func.func @_resize_kernel_fused(%arg0: i32, %arg1: memref<128x16xf32, #tpu.memory_space<vmem>>, %arg2: memref<32x16xf32, #tpu.memory_space<vmem>>, %arg3: memref<16x32xf32, #tpu.memory_space<vmem>>, %arg4: memref<256x32xf32, #tpu.memory_space<vmem>>) attributes {dimension_semantics = [#tpu.dimension_semantics<parallel>], iteration_bounds = array<i64: 1>, scalar_prefetch = 0 : i64, scratch_operands = 0 : i64, tpu.core_type = #tpu.core_type<tc>, window_params = [{transform_indices = @transform_0, window_bounds = array<i64: 128, 16>}, {pipeline_mode = #tpu.pipeline_mode<synchronous>, transform_indices = @transform_1, window_bounds = array<i64: 32, 16>}, {pipeline_mode = #tpu.pipeline_mode<synchronous>, transform_indices = @transform_2, window_bounds = array<i64: 16, 32>}, {transform_indices = @transform_3, window_bounds = array<i64: 256, 32>}]} {
    %c0 = arith.constant 0 : index
    %c0_0 = arith.constant 0 : index
    %0 = vector.load %arg1[%c0, %c0_0] : memref<128x16xf32, #tpu.memory_space<vmem>>, vector<128x16xf32>
    %c0_1 = arith.constant 0 : index
    %c0_2 = arith.constant 0 : index
    %1 = vector.load %arg3[%c0_1, %c0_2] : memref<16x32xf32, #tpu.memory_space<vmem>>, vector<16x32xf32>
    %cst = arith.constant dense<0.000000e+00> : vector<128x32xf32>
    %2 = tpu.matmul %0, %1, %cst {dimension_numbers = #tpu.dot_dimension_numbers<[1], [0], [0], [1], [0, 0, 1, 1], [], []>} : vector<128x16xf32>, vector<16x32xf32>, vector<128x32xf32> -> vector<128x32xf32>
    %3 = vector.shape_cast %2 : vector<128x32xf32> to vector<8x16x32xf32>
    %c0_3 = arith.constant 0 : index
    %c0_4 = arith.constant 0 : index
    %4 = vector.load %arg2[%c0_3, %c0_4] : memref<32x16xf32, #tpu.memory_space<vmem>>, vector<32x16xf32>
    %5 = vector.shape_cast %4 : vector<32x16xf32> to vector<1x32x16xf32>
    %6 = vector.shape_cast %5 : vector<1x32x16xf32> to vector<1x32x16xf32>
    %7 = vector.broadcast %6 : vector<1x32x16xf32> to vector<8x32x16xf32>
    "tpu.trace_start"() <{level = 10 : i32, message = "cok,ckw->cow"}> : () -> ()
    %cst_5 = arith.constant dense<0.000000e+00> : vector<8x32x32xf32>
    %8 = tpu.matmul %7, %3, %cst_5 {dimension_numbers = #tpu.dot_dimension_numbers<[2], [1], [1], [2], [0, 0, 0, 1, 1, 2], [0], [0]>} : vector<8x32x16xf32>, vector<8x16x32xf32>, vector<8x32x32xf32> -> vector<8x32x32xf32>
    "tpu.trace_stop"() : () -> ()
    %9 = vector.shape_cast %8 : vector<8x32x32xf32> to vector<256x32xf32>
    %c0_6 = arith.constant 0 : index
    %c0_7 = arith.constant 0 : index
    %10 = vector.load %arg4[%c0_6, %c0_7] : memref<256x32xf32, #tpu.memory_space<vmem>>, vector<256x32xf32>
    tpu.vector_store %arg4[%c0_6, %c0_7], %9 {strides = array<i32>} : memref<256x32xf32, #tpu.memory_space<vmem>>, vector<256x32xf32>,
    return
  }
  func.func @transform_0(%arg0: i32) -> (i32, i32) {
    %c0_i32 = arith.constant 0 : i32
    %c0_i32_0 = arith.constant 0 : i32
    return %arg0, %c0_i32 : i32, i32
  }
  func.func @transform_1(%arg0: i32) -> (i32, i32) {
    %c0_i32 = arith.constant 0 : i32
    %c0_i32_0 = arith.constant 0 : i32
    %c0_i32_1 = arith.constant 0 : i32
    return %c0_i32, %c0_i32_0 : i32, i32
  }
  func.func @transform_2(%arg0: i32) -> (i32, i32) {
    %c0_i32 = arith.constant 0 : i32
    %c0_i32_0 = arith.constant 0 : i32
    %c0_i32_1 = arith.constant 0 : i32
    return %c0_i32, %c0_i32_0 : i32, i32
  }
  func.func @transform_3(%arg0: i32) -> (i32, i32) {
    %c0_i32 = arith.constant 0 : i32
    %c0_i32_0 = arith.constant 0 : i32
    return %arg0, %c0_i32 : i32, i32
  }
}

</mosaic_0001>

<bundles_post_ra>
// kernel: resize.1
= control target key start
LH: loop header
LB: loop body
LE: loop exit
PB: predicated region body
PF: predicated region fallthrough
CT: control target
= control target key end

     0   :  { %8 = vsyncpa [#allocation3], 0  ;;  %s703_s0 = inlined_call_operand.hbm [shape: f32[128,16], index: 0, kind: input, shape index: {}]   ;;  %s704_s1 = inlined_call_operand.vmem [shape: f32[32,16], index: 1, kind: input, shape index: {}]   ;;  %s705_s2 = inlined_call_operand.vmem [shape: f32[16,32], index: 2, kind: input, shape index: {}]   ;;  %s706_s3 = inlined_call_operand.hbm [shape: f32[256,32], index: 3, kind: output, shape index: {}]  }
   0x1   :  { %9 = vsyncpa [#allocation4], 0  ;;  %s14_s14 = sshll.u32 %s703_s0, 4  ;;  %s569_s15 = smov [#allocation2]   ;;  %s15_s14 = int_to_ptr.hbm [resolvable:$true] %s14_s14 }
   0x2   :  { %s16_s16 = sshll.u32 %s569_s15, 4  ;;  %s570_s17 = smov 128   ;;  %s17_s16 = int_to_ptr.vmem [resolvable:$true] %s16_s16 }
   0x3   :  { %s571_s18 = smov 8  }
   0x4   :  { %22 = dma.hbm_to_vmem [thread:$0]  %s15_s14, 2048, %s17_s16, [#allocation3], %s570_s17, %s570_s17, %s571_s18  }
   0x5   :  { %565 = dma.done.wait [#allocation3], 2048  }
   0x6   :  { %566 = vsyncadd [#allocation3], 4294965248  ;;  %v48_v0 = vld [vmem:[%s705_s2 + $0x8] sm:$0xff]  ;;  %v47_v1 = vld [vmem:[%s705_s2] sm:$0xff]  ;;  %vm49_vm0 = vcmask 130048   ;;  %vm411_vm1 = vcmask 261120  }
   0x7   :  { %112 = vmatpush.msra.mxu0 %v48_v0  ;;  %v31_v2 = vld [vmem:[#allocation2] sm:$0xff]  ;;  %511 = vmatpush.msra.mxu3 %v48_v0  ;;  %v32_v3 = vld [vmem:[#allocation2 + $0x8] sm:$0xff]  ;;  %v33_v4 = vld [vmem:[#allocation2 + $0x10] sm:$0xff]  ;;  %s450_s5 = sshll.u32 %s706_s3, 4  ;;  %s451_s5 = int_to_ptr.hbm [resolvable:$true] %s450_s5 }
   0x8   :  { %v34_v5 = vld [vmem:[#allocation2 + $0x18] sm:$0xff]  ;;  %v35_v6 = vld [vmem:[#allocation2 + $0x20] sm:$0xff]  ;;  %v36_v8 = vld [vmem:[#allocation2 + $0x28] sm:$0xff] }
   0x9   :  { %113 = vmatpush.msra.mxu0 %v47_v1  ;;  %512 = vmatpush.msra.mxu3 %v47_v1  ;;  %v43_v7 = vld [vmem:[#allocation2 + $0x60] sm:$0xff]  ;;  %v44_v9 = vld [vmem:[#allocation2 + $0x68] sm:$0xff]  ;;  %v37_v10 = vld [vmem:[#allocation2 + $0x30] sm:$0xff] }
   0xa   :  { %463 = vmatmul.msk.f32.vlgmr.msra.gmra.mxu0 %vm49_vm0, %v31_v2  ;;  %475 = vmatmul.msk.f32.vlgmr.msra.gmra.mxu3 %vm49_vm0, %v43_v7  ;;  %v45_v11 = vld [vmem:[#allocation2 + $0x70] sm:$0xff]  ;;  %v38_v12 = vld [vmem:[#allocation2 + $0x38] sm:$0xff]  ;;  %v39_v14 = vld [vmem:[#allocation2 + $0x40] sm:$0xff] }
   0xb   :  { %v46_v13 = vld [vmem:[#allocation2 + $0x78] sm:$0xff]  ;;  %v40_v15 = vld [vmem:[#allocation2 + $0x48] sm:$0xff]  ;;  %v41_v16 = vld [vmem:[#allocation2 + $0x50] sm:$0xff] }
   0xc   :  { %v42_v17 = vld [vmem:[#allocation2 + $0x58] sm:$0xff]  ;;  %v163_v20 = vld [vmem:[%s704_s1] sm:$0xff]  ;;  %v164_v22 = vld [vmem:[%s704_s1 + $0x8] sm:$0xff] }
   0xd   :  { %v165_v24 = vld [vmem:[%s704_s1 + $0x10] sm:$0xff]  ;;  %v166_v26 = vld [vmem:[%s704_s1 + $0x18] sm:$0xff]  ;;  %s572_s1 = smov [#allocation5]  }
   0xe   :  { %s448_s29 = sshll.u32 %s572_s1, 4  ;;  %s449_s29 = int_to_ptr.vmem [resolvable:$true] %s448_s29 }
  0x12   :  { %464 = vmatmul.msk.f32.gmra.mxu0 %vm49_vm0, %v32_v3  ;;  %476 = vmatmul.msk.f32.gmra.mxu3 %vm49_vm0, %v44_v9 }
  0x1a   :  { %465 = vmatmul.msk.f32.gmra.mxu0 %vm49_vm0, %v33_v4  ;;  %477 = vmatmul.msk.f32.gmra.mxu3 %vm49_vm0, %v45_v11 }
  0x22   :  { %466 = vmatmul.msk.f32.gmra.mxu0 %vm49_vm0, %v34_v5  ;;  %478 = vmatmul.msk.f32.gmra.mxu3 %vm49_vm0, %v46_v13 }
  0x2a   :  { %467 = vmatmul.msk.f32.gmra.mxu0 %vm49_vm0, %v35_v6 }
  0x32   :  { %468 = vmatmul.msk.f32.gmra.mxu0 %vm49_vm0, %v36_v8 }
  0x3a   :  { %469 = vmatmul.msk.f32.gmra.mxu0 %vm49_vm0, %v37_v10 }
  0x42   :  { %470 = vmatmul.msk.f32.gmra.mxu0 %vm49_vm0, %v38_v12 }
  0x4a   :  { %471 = vmatmul.msk.f32.gmra.mxu0 %vm49_vm0, %v39_v14 }
  0x52   :  { %472 = vmatmul.msk.f32.gmra.mxu0 %vm49_vm0, %v40_v15 }
  0x5a   :  { %473 = vmatmul.msk.f32.gmra.mxu0 %vm49_vm0, %v41_v16 }
  0x62   :  { %474 = vmatmul.msk.f32.gmra.mxu0 %vm49_vm0, %v42_v17 }
  0x87   :  { %v115_v18 = vpop.f32.mrf.mxu0 }
  0x8d   :  { %v151_v28 = vpop.f32.mrf.mxu3 }
  0x8f   :  { %v118_v19 = vpop.f32.mrf.mxu0 }
  0x90   :  { %193 = vmatpush.msra.mxu1 %v118_v19 }
  0x92   :  { %194 = vmatpush.msra.mxu1 %v115_v18 }
  0x93   :  { %479 = vmatmul.msk.f32.vlgmr.msra.gmra.mxu1 %vm49_vm0, %v163_v20 }
  0x95   :  { %v154_v30 = vpop.f32.mrf.mxu3 }
  0x97   :  { %v121_v21 = vpop.f32.mrf.mxu0 }
  0x9b   :  { %480 = vmatmul.msk.f32.gmra.mxu1 %vm49_vm0, %v164_v22 }
  0x9d   :  { %v157_v32 = vpop.f32.mrf.mxu3 }
  0x9f   :  { %v124_v23 = vpop.f32.mrf.mxu0 }
  0xa0   :  { %222 = vmatpush.msra.mxu2 %v124_v23 }
  0xa2   :  { %223 = vmatpush.msra.mxu2 %v121_v21 }
  0xa3   :  { %483 = vmatmul.msk.f32.vlgmr.msra.gmra.mxu2 %vm49_vm0, %v163_v20  ;;  %481 = vmatmul.msk.f32.gmra.mxu1 %vm49_vm0, %v165_v24 }
  0xa5   :  { %v160_v35 = vpop.f32.mrf.mxu3 }
  0xa7   :  { %v127_v25 = vpop.f32.mrf.mxu0 }
  0xab   :  { %484 = vmatmul.msk.f32.gmra.mxu2 %vm49_vm0, %v164_v22  ;;  %482 = vmatmul.msk.f32.gmra.mxu1 %vm49_vm0, %v166_v26 }
  0xaf   :  { %v130_v27 = vpop.f32.mrf.mxu0 }
  0xb0   :  { %251 = vmatpush.msrb.mxu3 %v130_v27 }
  0xb2   :  { %252 = vmatpush.msrb.mxu3 %v127_v25 }
  0xb3   :  { %485 = vmatmul.msk.f32.gmra.mxu2 %vm49_vm0, %v165_v24  ;;  %487 = vmatmul.msk.f32.vlgmr.msrb.gmra.mxu3 %vm49_vm0, %v163_v20 }
  0xb7   :  { %v133_v29 = vpop.f32.mrf.mxu0 }
  0xbb   :  { %486 = vmatmul.msk.f32.gmra.mxu2 %vm49_vm0, %v166_v26  ;;  %488 = vmatmul.msk.f32.gmra.mxu3 %vm49_vm0, %v164_v22 }
  0xbf   :  { %v136_v31 = vpop.f32.mrf.mxu0 }
  0xc0   :  { %280 = vmatpush.msrb.mxu1 %v136_v31 }
  0xc2   :  { %281 = vmatpush.msrb.mxu1 %v133_v29 }
  0xc3   :  { %489 = vmatmul.msk.f32.gmra.mxu3 %vm49_vm0, %v165_v24  ;;  %491 = vmatmul.msk.f32.vlgmr.msrb.gmra.mxu1 %vm49_vm0, %v163_v20 }
  0xc4   :  { %367 = vmatpush.msra.mxu1 %v154_v30 }
  0xc6   :  { %368 = vmatpush.msra.mxu1 %v151_v28 }
  0xc7   :  { %v139_v33 = vpop.f32.mrf.mxu0 }
  0xcb   :  { %490 = vmatmul.msk.f32.gmra.mxu3 %vm49_vm0, %v166_v26  ;;  %492 = vmatmul.msk.f32.gmra.mxu1 %vm49_vm0, %v164_v22 }
  0xcf   :  { %v142_v34 = vpop.f32.mrf.mxu0 }
  0xd0   :  { %309 = vmatpush.msrb.mxu2 %v142_v34 }
  0xd2   :  { %310 = vmatpush.msrb.mxu2 %v139_v33 }
  0xd3   :  { %495 = vmatmul.msk.f32.vlgmr.msrb.gmra.mxu2 %vm49_vm0, %v163_v20  ;;  %493 = vmatmul.msk.f32.gmra.mxu1 %vm49_vm0, %v165_v24 }
  0xd4   :  { %396 = vmatpush.msra.mxu2 %v160_v35 }
  0xd6   :  { %397 = vmatpush.msra.mxu2 %v157_v32 }
  0xd7   :  { %v145_v36 = vpop.f32.mrf.mxu0 }
  0xdb   :  { %496 = vmatmul.msk.f32.gmra.mxu2 %vm49_vm0, %v164_v22  ;;  %494 = vmatmul.msk.f32.gmra.mxu1 %vm49_vm0, %v166_v26 }
  0xdf   :  { %v148_v37 = vpop.f32.mrf.mxu0 }
  0xe0   :  { %338 = vmatpush.msra.mxu3 %v148_v37 }
  0xe2   :  { %339 = vmatpush.msra.mxu3 %v145_v36 }
  0xe3   :  { %499 = vmatmul.msk.f32.vlgmr.msra.gmra.mxu3 %vm49_vm0, %v163_v20  ;;  %497 = vmatmul.msk.f32.gmra.mxu2 %vm49_vm0, %v165_v24 }
  0xe4   :  { %503 = vmatmul.msk.f32.vlgmr.msra.gmra.mxu1 %vm49_vm0, %v163_v20 }
  0xeb   :  { %500 = vmatmul.msk.f32.gmra.mxu3 %vm49_vm0, %v164_v22  ;;  %498 = vmatmul.msk.f32.gmra.mxu2 %vm49_vm0, %v166_v26 }
  0xec   :  { %504 = vmatmul.msk.f32.gmra.mxu1 %vm49_vm0, %v164_v22 }
  0xf3   :  { %501 = vmatmul.msk.f32.gmra.mxu3 %vm49_vm0, %v165_v24  ;;  %507 = vmatmul.msk.f32.vlgmr.msra.gmra.mxu2 %vm49_vm0, %v163_v20 }
  0xf4   :  { %505 = vmatmul.msk.f32.gmra.mxu1 %vm49_vm0, %v165_v24 }
  0xfb   :  { %502 = vmatmul.msk.f32.gmra.mxu3 %vm49_vm0, %v166_v26  ;;  %508 = vmatmul.msk.f32.gmra.mxu2 %vm49_vm0, %v164_v22 }
  0xfc   :  { %506 = vmatmul.msk.f32.gmra.mxu1 %vm49_vm0, %v166_v26 }
 0x103   :  { %509 = vmatmul.msk.f32.gmra.mxu2 %vm49_vm0, %v165_v24 }
 0x10b   :  { %510 = vmatmul.msk.f32.gmra.mxu2 %vm49_vm0, %v166_v26 }
 0x110   :  { %v196_v38 = vpop.f32.mrf.mxu1 }
 0x111   :  { %412 = vst.msk [vmem:[#allocation5] sm:$0xff] %vm411_vm1, %v196_v38 }
 0x118   :  { %v199_v39 = vpop.f32.mrf.mxu1 }
 0x119   :  { %413 = vst.msk [vmem:[#allocation5 + $0x8] sm:$0xff] %vm411_vm1, %v199_v39 }
 0x120   :  { %v202_v40 = vpop.f32.mrf.mxu1 }
 0x121   :  { %414 = vst.msk [vmem:[#allocation5 + $0x10] sm:$0xff] %vm411_vm1, %v202_v40 }
 0x126   :  { %v225_v41 = vpop.f32.mrf.mxu2 }
 0x127   :  { %416 = vst.msk [vmem:[#allocation5 + $0x20] sm:$0xff] %vm411_vm1, %v225_v41 }
 0x128   :  { %v205_v42 = vpop.f32.mrf.mxu1 }
 0x129   :  { %415 = vst.msk [vmem:[#allocation5 + $0x18] sm:$0xff] %vm411_vm1, %v205_v42 }
 0x12e   :  { %v228_v43 = vpop.f32.mrf.mxu2 }
 0x12f   :  { %417 = vst.msk [vmem:[#allocation5 + $0x28] sm:$0xff] %vm411_vm1, %v228_v43 }
 0x136   :  { %v231_v44 = vpop.f32.mrf.mxu2  ;;  %v254_v45 = vpop.f32.mrf.mxu3 }
 0x137   :  { %418 = vst.msk [vmem:[#allocation5 + $0x30] sm:$0xff] %vm411_vm1, %v231_v44 }
 0x138   :  { %420 = vst.msk [vmem:[#allocation5 + $0x40] sm:$0xff] %vm411_vm1, %v254_v45 }
 0x13e   :  { %v234_v46 = vpop.f32.mrf.mxu2  ;;  %v257_v47 = vpop.f32.mrf.mxu3 }
 0x13f   :  { %419 = vst.msk [vmem:[#allocation5 + $0x38] sm:$0xff] %vm411_vm1, %v234_v46 }
 0x140   :  { %421 = vst.msk [vmem:[#allocation5 + $0x48] sm:$0xff] %vm411_vm1, %v257_v47  ;;  %v283_v48 = vpop.f32.mrf.mxu1 }
 0x141   :  { %424 = vst.msk [vmem:[#allocation5 + $0x60] sm:$0xff] %vm411_vm1, %v283_v48 }
 0x146   :  { %v260_v49 = vpop.f32.mrf.mxu3 }
 0x147   :  { %422 = vst.msk [vmem:[#allocation5 + $0x50] sm:$0xff] %vm411_vm1, %v260_v49 }
 0x148   :  { %v286_v50 = vpop.f32.mrf.mxu1 }
 0x149   :  { %425 = vst.msk [vmem:[#allocation5 + $0x68] sm:$0xff] %vm411_vm1, %v286_v50 }
 0x14e   :  { %v263_v51 = vpop.f32.mrf.mxu3 }
 0x14f   :  { %423 = vst.msk [vmem:[#allocation5 + $0x58] sm:$0xff] %vm411_vm1, %v263_v51 }
 0x150   :  { %v289_v52 = vpop.f32.mrf.mxu1 }
 0x151   :  { %426 = vst.msk [vmem:[#allocation5 + $0x70] sm:$0xff] %vm411_vm1, %v289_v52 }
 0x156   :  { %v312_v53 = vpop.f32.mrf.mxu2 }
 0x157   :  { %428 = vst.msk [vmem:[#allocation5 + $0x80] sm:$0xff] %vm411_vm1, %v312_v53 }
 0x158   :  { %v292_v54 = vpop.f32.mrf.mxu1 }
 0x159   :  { %427 = vst.msk [vmem:[#allocation5 + $0x78] sm:$0xff] %vm411_vm1, %v292_v54 }
 0x15e   :  { %v315_v55 = vpop.f32.mrf.mxu2 }
 0x15f   :  { %429 = vst.msk [vmem:[#allocation5 + $0x88] sm:$0xff] %vm411_vm1, %v315_v55 }
 0x161   :  { %v370_v56 = vpop.f32.mrf.mxu1 }
 0x162   :  { %436 = vst.msk [vmem:[#allocation5 + $0xc0] sm:$0xff] %vm411_vm1, %v370_v56 }
 0x166   :  { %v341_v57 = vpop.f32.mrf.mxu3  ;;  %v318_v58 = vpop.f32.mrf.mxu2 }
 0x167   :  { %432 = vst.msk [vmem:[#allocation5 + $0xa0] sm:$0xff] %vm411_vm1, %v341_v57 }
 0x168   :  { %430 = vst.msk [vmem:[#allocation5 + $0x90] sm:$0xff] %vm411_vm1, %v318_v58 }
 0x169   :  { %v373_v59 = vpop.f32.mrf.mxu1 }
 0x16a   :  { %437 = vst.msk [vmem:[#allocation5 + $0xc8] sm:$0xff] %vm411_vm1, %v373_v59 }
 0x16e   :  { %v344_v60 = vpop.f32.mrf.mxu3  ;;  %v321_v61 = vpop.f32.mrf.mxu2 }
 0x16f   :  { %433 = vst.msk [vmem:[#allocation5 + $0xa8] sm:$0xff] %vm411_vm1, %v344_v60 }
 0x170   :  { %431 = vst.msk [vmem:[#allocation5 + $0x98] sm:$0xff] %vm411_vm1, %v321_v61 }
 0x171   :  { %v376_v62 = vpop.f32.mrf.mxu1 }
 0x172   :  { %438 = vst.msk [vmem:[#allocation5 + $0xd0] sm:$0xff] %vm411_vm1, %v376_v62 }
 0x176   :  { %v347_v63 = vpop.f32.mrf.mxu3  ;;  %v399_v0 = vpop.f32.mrf.mxu2 }
 0x177   :  { %434 = vst.msk [vmem:[#allocation5 + $0xb0] sm:$0xff] %vm411_vm1, %v347_v63 }
 0x178   :  { %440 = vst.msk [vmem:[#allocation5 + $0xe0] sm:$0xff] %vm411_vm1, %v399_v0 }
 0x179   :  { %v379_v1 = vpop.f32.mrf.mxu1 }
 0x17a   :  { %439 = vst.msk [vmem:[#allocation5 + $0xd8] sm:$0xff] %vm411_vm1, %v379_v1 }
 0x17e   :  { %v350_v2 = vpop.f32.mrf.mxu3  ;;  %v402_v3 = vpop.f32.mrf.mxu2 }
 0x17f   :  { %435 = vst.msk [vmem:[#allocation5 + $0xb8] sm:$0xff] %vm411_vm1, %v350_v2 }
 0x180   :  { %441 = vst.msk [vmem:[#allocation5 + $0xe8] sm:$0xff] %vm411_vm1, %v402_v3 }
 0x186   :  { %v405_v4 = vpop.f32.mrf.mxu2 }
 0x187   :  { %442 = vst.msk [vmem:[#allocation5 + $0xf0] sm:$0xff] %vm411_vm1, %v405_v4 }
 0x18e   :  { %v408_v5 = vpop.f32.mrf.mxu2 }
 0x18f   :  { %443 = vst.msk [vmem:[#allocation5 + $0xf8] sm:$0xff] %vm411_vm1, %v408_v5 }
 0x190   :  { %456 = dma.vmem_to_hbm [thread:$0]  %s449_s29, 4096, %s451_s5, [#allocation4], %s570_s17, %s570_s17, %s571_s18  }
 0x191   :  { %567 = dma.done.wait [#allocation4], 4096  }
 0x192   :  { %568 = vsyncadd [#allocation4], 4294963200 }
 0x193   :  { %461 = vsyncpa [#allocation3], 1 }
 0x194   :  { %462 = vsyncpa [#allocation4], 1 }

</bundles_post_ra>
